<compile_context>
chip_gen: v7x
topology: tpu7x:2x2x1
jax: 0.10.0
libtpu: 0.0.40
codegen_flags: <defaults>
</compile_context>

<pallas_src>
import functools

import jax
import jax.numpy as jnp
from jax.experimental import pallas as pl
from jax.experimental.pallas import tpu as pltpu

MAX_TILE_B = 32768  # upper bound on batch lanes per grid step (VMEM headroom on v5e/v7x)


def _round_up(n, m):
    return ((n + m - 1) // m) * m


def _choose_tile_b(batch, max_tile=MAX_TILE_B):
    """Pick a lane-width-multiple batch tile: big enough to amortize per-step
    overhead, small enough for VMEM, and giving >= 2 grid steps when B > 128
    so v7x's two TensorCores both get a share of the "parallel" axis."""
    b128 = _round_up(max(batch, 1), 128)
    if b128 <= 128:
        return 128
    return min(max_tile, _round_up(pl.cdiv(b128, 2), 128))


def mlp_kernel(x_ref, w1_ref, b1_ref, w2_ref, b2_ref, w3_ref, b3_ref, o_ref):
    xt = x_ref[...]                      # (2, TILE_B)   batch on lanes

    # fc1 + ReLU: (10,2) @ (2,TILE_B) on the MXU (extended slot), bias+ReLU on VPU.
    h1 = jnp.dot(w1_ref[...], xt, preferred_element_type=jnp.float32) + b1_ref[...]
    h1 = jnp.maximum(h1, 0.0)            # (10, TILE_B)

    # fc2 + ReLU: (10,10) @ (10,TILE_B) on the MXU.
    h2 = jnp.dot(w2_ref[...], h1, preferred_element_type=jnp.float32) + b2_ref[...]
    h2 = jnp.maximum(h2, 0.0)            # (10, TILE_B)

    # fc3: (1,10) @ (10,TILE_B) on the MXU -> lane-dense (1, TILE_B) row.
    z = jnp.dot(w3_ref[...], h2, preferred_element_type=jnp.float32) + b3_ref[...]

    # Sigmoid: exp on the EUP + exact reciprocal (approx=False) — still off the
    # busy VALU/vst slots, full f32 accuracy.
    o_ref[...] = pl.reciprocal(1.0 + jnp.exp(-z), approx=False)


@functools.partial(jax.jit, static_argnames=("tile_b",))
def neural_net_forward(x, params, tile_b=None):
    w1, b1, w2, b2, w3, b3 = params
    B = x.shape[0]
    if tile_b is None:
        tile_b = _choose_tile_b(B)
    num_tiles = pl.cdiv(B, tile_b)
    b_pad = num_tiles * tile_b

    # Present x as (2, B): batch on the lane axis.  No jnp.pad — the last input
    # tile is a Pallas edge block.  (x.T is only kept to preserve the module's
    # (B, 2) input API; pass a (2, B) array upstream to skip this relayout.)
    x_t = x.T

    def full(arr):  # weights/biases: whole array resident in VMEM every step
        return pl.BlockSpec(arr.shape, lambda i: (0, 0))

    out = pl.pallas_call(
        mlp_kernel,
        # Output over-allocated to whole tiles so every output store is a full,
        # unmasked lane-dense block; sliced back to B below.
        out_shape=jax.ShapeDtypeStruct((1, b_pad), jnp.float32),
        grid_spec=pltpu.PrefetchScalarGridSpec(
            num_scalar_prefetch=0,
            grid=(num_tiles,),
            in_specs=[
                pl.BlockSpec((2, tile_b), lambda i: (0, i)),   # x^T batch tile
                full(w1), full(b1), full(w2), full(b2), full(w3), full(b3),
            ],
            out_specs=pl.BlockSpec((1, tile_b), lambda i: (0, i)),
        ),
        compiler_params=pltpu.CompilerParams(
            dimension_semantics=("parallel",),
            vmem_limit_bytes=32 * 1024 * 1024,
        ),
    )(x_t, w1, b1, w2, b2, w3, b3)

    # Module returns (B, 1); consumers that accept (B,) can take out[0, :B] directly.
    return out[0, :B].reshape(B, 1)


def init_params(key):
    """nn.Linear-style U(-1/sqrt(fan_in), 1/sqrt(fan_in)) init, PyTorch (out, in) layout."""
    def linear(k, fan_in, fan_out):
        kw, kb = jax.random.split(k)
        bound = 1.0 / (fan_in ** 0.5)
        w = jax.random.uniform(kw, (fan_out, fan_in), jnp.float32, -bound, bound)
        b = jax.random.uniform(kb, (fan_out, 1), jnp.float32, -bound, bound)
        return w, b

    k1, k2, k3 = jax.random.split(key, 3)
    w1, b1 = linear(k1, 2, 10)
    w2, b2 = linear(k2, 10, 10)
    w3, b3 = linear(k3, 10, 1)
    return (w1, b1, w2, b2, w3, b3)


def reference_forward(x, params):
    w1, b1, w2, b2, w3, b3 = params
    h1 = jnp.maximum(x @ w1.T + b1.T, 0.0)
    h2 = jnp.maximum(h1 @ w2.T + b2.T, 0.0)
    return jax.nn.sigmoid(h2 @ w3.T + b3.T)


if __name__ == "__main__":
    key = jax.random.PRNGKey(0)
    kx, kp = jax.random.split(key)
    B = 200                          # exercises the edge block (200 -> 256) and 2 grid steps
    x = jax.random.normal(kx, (B, 2), jnp.float32)
    params = init_params(kp)

    out = jax.block_until_ready(neural_net_forward(x, params))
    ref = reference_forward(x, params)

    assert out.shape == (B, 1), out.shape
    # Loose-ish tolerance only for default-precision MXU passes vs the XLA reference.
    assert jnp.allclose(out, ref, atol=1e-3, rtol=1e-3), float(jnp.max(jnp.abs(out - ref)))
    print("KERNEL_OK")
</pallas_src>

<mosaic_0001>
module attributes {stable_mosaic.version = 11 : i64} {
  func.func @mlp_kernel(%arg0: i32, %arg1: memref<2x128xf32, #tpu.memory_space<vmem>>, %arg2: memref<10x2xf32, #tpu.memory_space<vmem>>, %arg3: memref<10x1xf32, #tpu.memory_space<vmem>>, %arg4: memref<10x10xf32, #tpu.memory_space<vmem>>, %arg5: memref<10x1xf32, #tpu.memory_space<vmem>>, %arg6: memref<1x10xf32, #tpu.memory_space<vmem>>, %arg7: memref<1x1xf32, #tpu.memory_space<vmem>>, %arg8: memref<1x128xf32, #tpu.memory_space<vmem>>) attributes {dimension_semantics = [#tpu.dimension_semantics<parallel>], iteration_bounds = array<i64: 2>, scalar_prefetch = 0 : i64, scratch_operands = 0 : i64, tpu.core_type = #tpu.core_type<tc>, window_params = [{transform_indices = @transform_0, window_bounds = array<i64: 2, 128>}, {pipeline_mode = #tpu.pipeline_mode<synchronous>, transform_indices = @transform_1, window_bounds = array<i64: 10, 2>}, {pipeline_mode = #tpu.pipeline_mode<synchronous>, transform_indices = @transform_2, window_bounds = array<i64: 10, 1>}, {pipeline_mode = #tpu.pipeline_mode<synchronous>, transform_indices = @transform_3, window_bounds = array<i64: 10, 10>}, {pipeline_mode = #tpu.pipeline_mode<synchronous>, transform_indices = @transform_4, window_bounds = array<i64: 10, 1>}, {pipeline_mode = #tpu.pipeline_mode<synchronous>, transform_indices = @transform_5, window_bounds = array<i64: 1, 10>}, {pipeline_mode = #tpu.pipeline_mode<synchronous>, transform_indices = @transform_6, window_bounds = array<i64: 1, 1>}, {transform_indices = @transform_7, window_bounds = array<i64: 1, 128>}]} {
    %c0 = arith.constant 0 : index
    %c0_0 = arith.constant 0 : index
    %0 = vector.load %arg1[%c0, %c0_0] : memref<2x128xf32, #tpu.memory_space<vmem>>, vector<2x128xf32>
    %c0_1 = arith.constant 0 : index
    %c0_2 = arith.constant 0 : index
    %1 = vector.load %arg2[%c0_1, %c0_2] : memref<10x2xf32, #tpu.memory_space<vmem>>, vector<10x2xf32>
    %cst = arith.constant dense<0.000000e+00> : vector<10x128xf32>
    %2 = tpu.matmul %1, %0, %cst {dimension_numbers = #tpu.dot_dimension_numbers<[1], [0], [0], [1], [0, 0, 1, 1], [], []>} : vector<10x2xf32>, vector<2x128xf32>, vector<10x128xf32> -> vector<10x128xf32>
    %c0_3 = arith.constant 0 : index
    %c0_4 = arith.constant 0 : index
    %3 = vector.load %arg3[%c0_3, %c0_4] : memref<10x1xf32, #tpu.memory_space<vmem>>, vector<10x1xf32>
    %4 = vector.broadcast %3 : vector<10x1xf32> to vector<10x128xf32>
    %5 = arith.addf %2, %4 : vector<10x128xf32>
    %cst_5 = arith.constant 0.000000e+00 : f32
    %6 = vector.broadcast %cst_5 : f32 to vector<10x128xf32>
    %7 = arith.maximumf %5, %6 : vector<10x128xf32>
    %c0_6 = arith.constant 0 : index
    %c0_7 = arith.constant 0 : index
    %8 = vector.load %arg4[%c0_6, %c0_7] : memref<10x10xf32, #tpu.memory_space<vmem>>, vector<10x10xf32>
    %cst_8 = arith.constant dense<0.000000e+00> : vector<10x128xf32>
    %9 = tpu.matmul %8, %7, %cst_8 {dimension_numbers = #tpu.dot_dimension_numbers<[1], [0], [0], [1], [0, 0, 1, 1], [], []>} : vector<10x10xf32>, vector<10x128xf32>, vector<10x128xf32> -> vector<10x128xf32>
    %c0_9 = arith.constant 0 : index
    %c0_10 = arith.constant 0 : index
    %10 = vector.load %arg5[%c0_9, %c0_10] : memref<10x1xf32, #tpu.memory_space<vmem>>, vector<10x1xf32>
    %11 = vector.broadcast %10 : vector<10x1xf32> to vector<10x128xf32>
    %12 = arith.addf %9, %11 : vector<10x128xf32>
    %cst_11 = arith.constant 0.000000e+00 : f32
    %13 = vector.broadcast %cst_11 : f32 to vector<10x128xf32>
    %14 = arith.maximumf %12, %13 : vector<10x128xf32>
    %c0_12 = arith.constant 0 : index
    %c0_13 = arith.constant 0 : index
    %15 = vector.load %arg6[%c0_12, %c0_13] : memref<1x10xf32, #tpu.memory_space<vmem>>, vector<1x10xf32>
    %cst_14 = arith.constant dense<0.000000e+00> : vector<1x128xf32>
    %16 = tpu.matmul %15, %14, %cst_14 {dimension_numbers = #tpu.dot_dimension_numbers<[1], [0], [0], [1], [0, 0, 1, 1], [], []>} : vector<1x10xf32>, vector<10x128xf32>, vector<1x128xf32> -> vector<1x128xf32>
    %c0_15 = arith.constant 0 : index
    %c0_16 = arith.constant 0 : index
    %17 = vector.load %arg7[%c0_15, %c0_16] : memref<1x1xf32, #tpu.memory_space<vmem>>, vector<1x1xf32>
    %18 = vector.broadcast %17 : vector<1x1xf32> to vector<1x128xf32>
    %19 = arith.addf %16, %18 : vector<1x128xf32>
    %cst_17 = arith.constant 0.000000e+00 : f32
    %20 = vector.broadcast %cst_17 : f32 to vector<1x128xf32>
    %21 = arith.subf %20, %19 : vector<1x128xf32>
    %22 = math.exp %21 : vector<1x128xf32>
    %cst_18 = arith.constant 1.000000e+00 : f32
    %23 = vector.broadcast %cst_18 : f32 to vector<1x128xf32>
    %24 = arith.addf %23, %22 : vector<1x128xf32>
    %25 = tpu.reciprocal %24 : vector<1x128xf32> -> vector<1x128xf32>
    %c0_19 = arith.constant 0 : index
    %c0_20 = arith.constant 0 : index
    %26 = vector.load %arg8[%c0_19, %c0_20] : memref<1x128xf32, #tpu.memory_space<vmem>>, vector<1x128xf32>
    tpu.vector_store %arg8[%c0_19, %c0_20], %25 {strides = array<i32>} : memref<1x128xf32, #tpu.memory_space<vmem>>, vector<1x128xf32>,
    return
  }
  func.func @transform_0(%arg0: i32) -> (i32, i32) {
    %c0_i32 = arith.constant 0 : i32
    %c0_i32_0 = arith.constant 0 : i32
    return %c0_i32, %arg0 : i32, i32
  }
  func.func @transform_1(%arg0: i32) -> (i32, i32) {
    %c0_i32 = arith.constant 0 : i32
    %c0_i32_0 = arith.constant 0 : i32
    %c0_i32_1 = arith.constant 0 : i32
    return %c0_i32, %c0_i32_0 : i32, i32
  }
  func.func @transform_2(%arg0: i32) -> (i32, i32) {
    %c0_i32 = arith.constant 0 : i32
    %c0_i32_0 = arith.constant 0 : i32
    %c0_i32_1 = arith.constant 0 : i32
    return %c0_i32, %c0_i32_0 : i32, i32
  }
  func.func @transform_3(%arg0: i32) -> (i32, i32) {
    %c0_i32 = arith.constant 0 : i32
    %c0_i32_0 = arith.constant 0 : i32
    %c0_i32_1 = arith.constant 0 : i32
    return %c0_i32, %c0_i32_0 : i32, i32
  }
  func.func @transform_4(%arg0: i32) -> (i32, i32) {
    %c0_i32 = arith.constant 0 : i32
    %c0_i32_0 = arith.constant 0 : i32
    %c0_i32_1 = arith.constant 0 : i32
    return %c0_i32, %c0_i32_0 : i32, i32
  }
  func.func @transform_5(%arg0: i32) -> (i32, i32) {
    %c0_i32 = arith.constant 0 : i32
    %c0_i32_0 = arith.constant 0 : i32
    %c0_i32_1 = arith.constant 0 : i32
    return %c0_i32, %c0_i32_0 : i32, i32
  }
  func.func @transform_6(%arg0: i32) -> (i32, i32) {
    %c0_i32 = arith.constant 0 : i32
    %c0_i32_0 = arith.constant 0 : i32
    %c0_i32_1 = arith.constant 0 : i32
    return %c0_i32, %c0_i32_0 : i32, i32
  }
  func.func @transform_7(%arg0: i32) -> (i32, i32) {
    %c0_i32 = arith.constant 0 : i32
    %c0_i32_0 = arith.constant 0 : i32
    return %c0_i32, %arg0 : i32, i32
  }
}

</mosaic_0001>

<bundles_post_ra>
// kernel: neural_net_forward.1
= control target key start
LH: loop header
LB: loop body
LE: loop exit
PB: predicated region body
PF: predicated region fallthrough
CT: control target
= control target key end

     0   :  { %s748_s26 = smov 0   ;;  %s814_s0 = inlined_call_operand.vmem [shape: f32[2,200], index: 0, kind: input, shape index: {}]   ;;  %s815_s1 = inlined_call_operand.vmem [shape: f32[10,2], index: 1, kind: input, shape index: {}]   ;;  %s816_s2 = inlined_call_operand.vmem [shape: f32[10,1], index: 2, kind: input, shape index: {}]   ;;  %s817_s3 = inlined_call_operand.vmem [shape: f32[10,10], index: 3, kind: input, shape index: {}]   ;;  %s818_s4 = inlined_call_operand.vmem [shape: f32[10,1], index: 4, kind: input, shape index: {}]   ;;  %s819_s5 = inlined_call_operand.vmem [shape: f32[1,10], index: 5, kind: input, shape index: {}]   ;;  %s820_s6 = inlined_call_operand.<no memory space> [shape: f32[1,1], index: 6, kind: input, shape index: {}]   ;;  %s821_s7 = inlined_call_operand.vmem [shape: f32[1,256], index: 7, kind: output, shape index: {}]  }
   0x1   :  { %v12_v0 = vstv %s820_s6 }
   0x2   :  { %13 = vst [vmem:[#allocation2] sm:$0x1] %v12_v0 }
   0x3 LB: > { %s618_s27 = sadd.s32 4294967295, %s698_s26   ;;  %p622_p0 = scmp.ge.s32.totalorder %s698_s26, 1  ;;  %s698_s26 = sphi %s748_s26, %s19_s26  }
   0x4   : > { %p238_p1 = scmp.lt.s32.totalorder %s698_s26, 3 }
   0x6   : > { %p239_p2 = pnand %p622_p0, %p238_p1 }
   0x7   : > { %p267_p3 = scmp.lt.s32.totalorder (!%p239_p2), %s618_s27, 1  ;;  %v275_v1 = vld [vmem:[%s815_s1] sm:$0xff] (!%p239_p2)  ;;  %vm289_vm0 = vcmask (!%p239_p2), 15360   ;;  %v700_v3 = vmov (!%p239_p2), 0   ;;  %vm296_vm1 = vcmask (!%p239_p2), 1041408   ;;  %vm391_vm2 = vcmask (!%p239_p2), 80896  }
   0x8   : > { %242 = sbr.rel (%p239_p2) target bundleno = 709 (0x2c5), region = 48  ;;  %646 = vmatprep.mubr.msk.f32.mxu0 (!%p239_p2), %vm289_vm0, %v275_v1  ;;  %v277_v2 = vld [vmem:[%s816_s2] sm:$0xff] (!%p239_p2)  ;;  %686 = vset.pattern.permute.xlu0 (!%p239_p2), %v700_v3  ;;  %v278_v4 = vld [vmem:[%s816_s2 + $0x8] sm:$0x3] (!%p239_p2)  ;;  %vm701_vm3 = vmmov (!%p239_p2), 1   ;;  %v702_v22 = vmov (!%p239_p2), 0.0|0.0   ;;  %v485_v34 = vlaneseq (!%p239_p2) }
   0x9   : > { %687 = vset.pattern.permute.xlu1 (!%p239_p2), %v700_v3  ;;  %281 = vperm.xlu0 (!%p239_p2), %686, %v277_v2   ;;  %v276_v6 = vld [vmem:[%s815_s1 + $0x8] sm:$0x3] (!%p239_p2)  ;;  %v479_v7 = vld [vmem:[#allocation2] sm:$0x1] (!%p239_p2)  ;;  %vm789_vm4 = vmpackc.low (!%p239_p2), %vm296_vm1, %vm701_vm3  ;;  %vm703_vm5 = vmmov (!%p239_p2), 0   ;;  %v704_v23 = vmov (!%p239_p2), 0.0  }
   0xa   : > { %v377_v8 = vld [vmem:[%s817_s3] sm:$0xff] (!%p239_p2)  ;;  %v380_v10 = vld [vmem:[%s818_s4 + $0x8] sm:$0x3] (!%p239_p2)  ;;  %v486_v35 = vshrl.u32 (!%p239_p2), %v485_v34, 7 }
   0xb   : > { %653 = vmatprep.mubr.msk.f32.mxu1 (!%p239_p2), %vm391_vm2, %v377_v8  ;;  %v379_v9 = vld [vmem:[%s818_s4] sm:$0xff] (!%p239_p2)  ;;  %v378_v21 = vld [vmem:[%s817_s3 + $0x8] sm:$0x3] (!%p239_p2) }
   0xc   : > { %383 = vperm.xlu1 (!%p239_p2), %687, %v379_v9   ;;  %v478_v33 = vld [vmem:[%s819_s5] sm:$0x1] (!%p239_p2)  ;;  %v487_v36 = vsub.s32 (!%p239_p2), 0, %v486_v35 }
   0xd   : > { %286 = vperm.xlu0 (!%p239_p2), %686, %v278_v4  }
   0xf   : > { %s825_s27 = smov (!%p267_p3, %s618_s27), 1 }
  0x10   : > { %s623_s8 = sshll.u32 %s825_s27, 1  ;;  %388 = vperm.xlu1 %687, %v380_v10   ;;  %s273_s6 = scalar_lea.vmem %s821_s7, %s825_s27 }
  0x11   : > { %s270_s13 = scalar_lea.vmem %s814_s0, %s623_s8  ;;  %482 = vperm.xlu0 %686, %v479_v7  }
  0x12   : > { %v274_v5 = vld [vmem:[%s270_s13] sm:$0x3] }
  0x13   : > { %644 = vmatprep.subr.msk.mxu0 %vm296_vm1, %v274_v5 }
  0x14   : > { %645 = vmatpush3.msk.msra.mxu0 %vm296_vm1, %v274_v5 }
  0x15   : > { %647 = vmatmul.mubr.msk.f32.vlgmr.msra.gmra.mrb[0].mxu0 %vm289_vm0, %v276_v6  ;;  %669 = vmatprep.subr.bf16.mxu0 %v702_v22 }
  0x16   : > { %660 = vmatprep.mubr.msk.f32.mxu0 %vm703_vm5, %v704_v23 }
  0x88   : > { %v282_v11 = vpop.permute.xlu0 %281 }
  0x8b   : > { %v384_v24 = vpop.permute.xlu1 %383 }
  0x8c   : > { %v287_v12 = vpop.permute.xlu0 %286 }
  0x8f   : > { %v389_v25 = vpop.permute.xlu1 %388 }
  0x90   : > { %v483_v37 = vpop.permute.xlu0 %482 }
  0x91   : > { %v488_v38 = vrot.slane %v483_v37, %v487_v36 }
  0xe8   : > { %v648_v13 = vpop.f32.mrb[0].mxu0 }
  0xe9   : > { %v372_v14 = vadd.f32 %v648_v13, %v287_v12  ;;  %v366_v15 = vpop.f32.mrb[1].mxu0 }
  0xea   : > { %v367_v16 = vadd.f32 %v366_v15, %v282_v11 }
  0xeb   : > { %v376_v17 = vmax.f32 %v372_v14, 0.0 }
  0xec   : > { %v375_v18 = vmax.f32 %v367_v16, 0.0 }
  0xee   : > { %v663_v20 = vpack.c.bf16 %v376_v17, %v375_v18 }
  0xf0   : > { %665 = vmatprep.subr.msk.bf16.mxu1 %vm789_vm4, %v663_v20 }
  0xf1   : > { %668 = vmatpush3.bf16.msk.msra.mxu1 %vm789_vm4, %v663_v20 }
  0xf4   : > { %654 = vmatmul.mubr.msk.f32.vlgmr.msra.gmra.mrb[0].mxu1 %vm391_vm2, %v378_v21 }
 0x1c7   : > { %v655_v26 = vpop.f32.mrb[0].mxu1 }
 0x1c8   : > { %v473_v27 = vadd.f32 %v655_v26, %v389_v25  ;;  %v467_v28 = vpop.f32.mrb[1].mxu1 }
 0x1c9   : > { %v468_v29 = vadd.f32 %v467_v28, %v384_v24 }
 0x1ca   : > { %v477_v30 = vmax.f32 %v473_v27, 0.0 }
 0x1cb   : > { %v476_v31 = vmax.f32 %v468_v29, 0.0 }
 0x1cd   : > { %v670_v32 = vpack.c.bf16 %v477_v30, %v476_v31 }
 0x1cf   : > { %672 = vmatpush3.bf16.msk.msra.mxu0 %vm789_vm4, %v670_v32 }
 0x1d2   : > { %661 = vmatmul.mubr.msk.f32.vlgmr.msra.gmra.mrb[2].mxu0 %vm391_vm2, %v478_v33 }
 0x2a5   : > { %v561_v39 = vpop.f32.mrb[2].mxu0 }
 0x2a6   : > { %v562_v40 = vadd.f32 %v561_v39, %v488_v38  ;;  %v662_v41 = vpop.f32.mrb[3].mxu0 }
 0x2a8   : > { %v565_v42 = vsub.f32 0.0, %v562_v40 }
 0x2aa   : > { %v566_v43 = vmul.f32 1.442695, %v565_v42 }
 0x2ac   : > { %688 = vpow2.f32 %v566_v43 }
 0x2b6   : > { %v689_v44 = vpop.eup %688 }
 0x2b7   : > { %v568_v45 = vadd.f32 1.0, %v689_v44 }
 0x2b9   : > { %690 = vrcp.f32 %v568_v45 }
 0x2c3   : > { %v691_v46 = vpop.eup %690 }
 0x2c4   : > { %570 = vst [vmem:[%s273_s6] sm:$0x1] %v691_v46 }
 0x2c5 PF: > { %s19_s26 = sadd.s32 1, %s698_s26  }
 0x2c6   : > { %p16_p4 = scmp.ge.s32.totalorder %s19_s26, 4  }
 0x2c8   :  { %18 = sbr.rel (!%p16_p4) target bundleno = 3 (0x3), region = 78 }

</bundles_post_ra>
